<compile_context>
chip_gen: v7x
topology: tpu7x:2x2x1
jax: 0.10.0
libtpu: 0.0.40
codegen_flags: <defaults>
</compile_context>

<pallas_src>
import functools

import jax
import jax.numpy as jnp
import numpy as np
from jax.experimental import pallas as pl
from jax.experimental.pallas import tpu as pltpu


def _specaugment_kernel(mask_value, time_masks, freq_masks,
                        t_bounds_ref, f_bounds_ref,   # SMEM scalar-prefetch, flat int32
                        x_ref, o_ref):
    b = pl.program_id(0)
    _, F_, TT = x_ref.shape                      # block is (1, F, TT)
    t0 = pl.program_id(1) * TT                   # global time offset of this tile

    # 1-D index vectors (narrow vregs; never materialize a full (F,T) iota).
    t_idx = jax.lax.broadcasted_iota(jnp.int32, (1, 1, TT), 2) + t0
    f_idx = jax.lax.broadcasted_iota(jnp.int32, (1, F_, 1), 1)

    # time masks -> (1, 1, TT).  Bounds layout: [(b*nm + m)*2 + {0:start, 1:end}]
    t_mask = jnp.zeros((1, 1, TT), dtype=jnp.bool_)
    for m in range(time_masks):
        base = (b * time_masks + m) * 2
        s = t_bounds_ref[base]
        e = t_bounds_ref[base + 1]
        t_mask = jnp.logical_or(t_mask, jnp.logical_and(t_idx >= s, t_idx < e))

    # freq masks -> (1, F, 1)
    f_mask = jnp.zeros((1, F_, 1), dtype=jnp.bool_)
    for m in range(freq_masks):
        base = (b * freq_masks + m) * 2
        s = f_bounds_ref[base]
        e = f_bounds_ref[base + 1]
        f_mask = jnp.logical_or(f_mask, jnp.logical_and(f_idx >= s, f_idx < e))

    fill = jnp.asarray(mask_value, dtype=x_ref.dtype)
    # Single full-size pass: broadcast the 1-D masks only here.
    o_ref[...] = jnp.where(jnp.logical_or(t_mask, f_mask), fill, x_ref[...])


def _sample_mask_bounds(key, num_masks, width, limit, batch_size):
    """torch vectorized semantics: w = floor(rand*width); s = floor(rand*(limit-w)); e = s+w.

    No extra clamping: we match the reference `_apply_masks` path exactly.
    """
    if num_masks == 0:
        # degenerate empty intervals so the kernel signature stays fixed
        z = jnp.zeros((batch_size, 1), dtype=jnp.int32)
        return z, z
    kw, ks = jax.random.split(key)
    w = (jax.random.uniform(kw, (batch_size, num_masks), dtype=jnp.float32) * width)
    w = w.astype(jnp.int32)
    s = (jax.random.uniform(ks, (batch_size, num_masks), dtype=jnp.float32)
         * (limit - w.astype(jnp.float32)))
    s = s.astype(jnp.int32)
    return s, s + w


def _pack_bounds(s, e):
    """(B, nm) start/end -> flat 1-D int32 [(b*nm+m)*2 + {0,1}]; tiny SMEM footprint."""
    return jnp.stack([s, e], axis=-1).reshape(-1).astype(jnp.int32)


def _pick_time_tile(T, F, itemsize, batch, target_bytes=4 * 1024 * 1024):
    """Whole T when it fits the per-block budget (full-dim blocks are exempt from
    the 128-multiple rule); otherwise the largest 128-multiple under the budget
    (the final partial tile gets store-clipped by Pallas)."""
    if F * T * itemsize <= target_bytes:
        tt = T
    else:
        tt = max(128, (target_bytes // (F * itemsize)) // 128 * 128)
    # v7x megacore: keep >=2 grid steps along a parallel axis even for batch=1.
    if batch == 1 and tt >= T and T > 128:
        tt = max(128, (-(-((T + 1) // 2) // 128)) * 128)
    return int(tt)


@functools.lru_cache(maxsize=None)
def _build_call(B, F_, T_, dtype_name, time_masks, freq_masks, mask_value):
    dtype = jnp.dtype(dtype_name)
    TT = _pick_time_tile(T_, F_, dtype.itemsize, B)
    n_t_tiles = pl.cdiv(T_, TT)

    kernel = functools.partial(_specaugment_kernel, mask_value, time_masks, freq_masks)

    grid_spec = pltpu.PrefetchScalarGridSpec(
        num_scalar_prefetch=2,
        grid=(B, n_t_tiles),
        in_specs=[pl.BlockSpec((1, F_, TT), lambda b, t, *_: (b, 0, t))],
        out_specs=pl.BlockSpec((1, F_, TT), lambda b, t, *_: (b, 0, t)),
    )

    call = pl.pallas_call(
        kernel,
        out_shape=jax.ShapeDtypeStruct((B, F_, T_), dtype),
        grid_spec=grid_spec,
        # arg index 2 = the spectrogram (after the 2 scalar-prefetch args);
        # SpecAugment is read-modify-write, so alias it to the output.
        input_output_aliases={2: 0},
        cost_estimate=pl.CostEstimate(
            flops=0, transcendentals=0,
            bytes_accessed=2 * B * F_ * T_ * dtype.itemsize),
        compiler_params=pltpu.CompilerParams(
            dimension_semantics=("parallel", "parallel"),
            vmem_limit_bytes=32 * 1024 * 1024),
    )
    # Donate the spectrogram so XLA can honor the alias with zero extra copies.
    return jax.jit(call, donate_argnums=(2,))


def spec_augment(input_spec, length, *, freq_masks=2, time_masks=2,
                 freq_width=5, time_width=10, mask_value=0.0, key=None):
    if key is None:
        key = jax.random.PRNGKey(0)
    B, F_, T_ = input_spec.shape
    kt, kf = jax.random.split(key)

    # --- time-axis mask intervals ---
    if isinstance(time_width, float):
        # adaptive: max width is a fraction of the utterance length, clamped to T
        tw = jnp.minimum(time_width * length.astype(jnp.float32), float(T_))[:, None]
    else:
        tw = float(time_width)
    t_start, t_end = _sample_mask_bounds(
        kt, time_masks, tw, length.astype(jnp.float32)[:, None], B)

    # --- freq-axis mask intervals ---
    f_start, f_end = _sample_mask_bounds(kf, freq_masks, float(freq_width), float(F_), B)

    t_bounds = _pack_bounds(t_start, t_end)
    f_bounds = _pack_bounds(f_start, f_end)

    call = _build_call(B, F_, T_, jnp.dtype(input_spec.dtype).name,
                       max(time_masks, 1), max(freq_masks, 1), float(mask_value))
    out = call(t_bounds, f_bounds, input_spec)
    # also return the sampled intervals so the caller/test can verify semantics
    return out, (t_start, t_end, f_start, f_end)


def _reference_numpy(x_np, t_s, t_e, f_s, f_e, mask_value):
    x_np = x_np.copy()
    B, F_, T_ = x_np.shape
    t_idx = np.arange(T_)
    f_idx = np.arange(F_)
    for b in range(B):
        tm = np.zeros(T_, dtype=bool)
        for m in range(t_s.shape[1]):
            tm |= (t_idx >= t_s[b, m]) & (t_idx < t_e[b, m])
        fm = np.zeros(F_, dtype=bool)
        for m in range(f_s.shape[1]):
            fm |= (f_idx >= f_s[b, m]) & (f_idx < f_e[b, m])
        full = tm[None, :] | fm[:, None]
        x_np[b][full] = mask_value
    return x_np


if __name__ == "__main__":
    root = jax.random.PRNGKey(0)
    k_x1, k_aug1, k_x2, k_aug2, k_x3, k_aug3 = jax.random.split(root, 6)

    # --- case 1: small non-128 T (full-T block, no pad/slice), integer time_width ---
    B, F_, T_ = 2, 16, 32
    x1 = jax.random.normal(k_x1, (B, F_, T_), dtype=jnp.float32)
    x1_np = np.array(x1)  # snapshot before the (donated + aliased) kernel call
    length1 = jnp.array([32, 24], dtype=jnp.int32)

    out1, (t_s, t_e, f_s, f_e) = spec_augment(
        x1, length1, freq_masks=2, time_masks=2, freq_width=5, time_width=10,
        mask_value=0.0, key=k_aug1)
    out1 = jax.block_until_ready(out1)
    ref1 = _reference_numpy(x1_np, np.array(t_s), np.array(t_e),
                            np.array(f_s), np.array(f_e), 0.0)
    np.testing.assert_allclose(np.array(out1), ref1, rtol=0, atol=0)

    # --- case 2: 128-multiple T, adaptive time_width ---
    B2, F2, T2 = 2, 16, 256
    x2 = jax.random.normal(k_x2, (B2, F2, T2), dtype=jnp.float32)
    x2_np = np.array(x2)
    length2 = jnp.array([256, 200], dtype=jnp.int32)

    out2, (t_s2, t_e2, f_s2, f_e2) = spec_augment(
        x2, length2, freq_masks=2, time_masks=4, freq_width=5, time_width=0.05,
        mask_value=0.0, key=k_aug2)
    out2 = jax.block_until_ready(out2)
    ref2 = _reference_numpy(x2_np, np.array(t_s2), np.array(t_e2),
                            np.array(f_s2), np.array(f_e2), 0.0)
    np.testing.assert_allclose(np.array(out2), ref2, rtol=0, atol=0)

    # --- case 3: batch=1, ragged T -> multi-tile grid with a clipped partial tile ---
    B3, F3, T3 = 1, 16, 200
    x3 = jax.random.normal(k_x3, (B3, F3, T3), dtype=jnp.float32)
    x3_np = np.array(x3)
    length3 = jnp.array([150], dtype=jnp.int32)

    out3, (t_s3, t_e3, f_s3, f_e3) = spec_augment(
        x3, length3, freq_masks=1, time_masks=3, freq_width=4, time_width=20,
        mask_value=0.0, key=k_aug3)
    out3 = jax.block_until_ready(out3)
    ref3 = _reference_numpy(x3_np, np.array(t_s3), np.array(t_e3),
                            np.array(f_s3), np.array(f_e3), 0.0)
    np.testing.assert_allclose(np.array(out3), ref3, rtol=0, atol=0)

    print("KERNEL_OK")
</pallas_src>

<mosaic_0001>
module attributes {stable_mosaic.version = 11 : i64} {
  func.func @_specaugment_kernel(%arg0: i32, %arg1: i32, %arg2: memref<8xi32, #tpu.memory_space<smem>>, %arg3: memref<8xi32, #tpu.memory_space<smem>>, %arg4: memref<1x16x32xf32, #tpu.memory_space<vmem>>, %arg5: memref<1x16x32xf32, #tpu.memory_space<vmem>>) attributes {dimension_semantics = [#tpu.dimension_semantics<parallel>, #tpu.dimension_semantics<parallel>], iteration_bounds = array<i64: 2, 1>, scalar_prefetch = 2 : i64, scratch_operands = 0 : i64, tpu.core_type = #tpu.core_type<tc>, window_params = [{transform_indices = @transform_0, window_bounds = array<i64: 1, 16, 32>}, {transform_indices = @transform_1, window_bounds = array<i64: 1, 16, 32>}]} {
    %c32_i32 = arith.constant 32 : i32
    %0 = arith.muli %arg1, %c32_i32 : i32
    %1 = tpu.iota {dimensions = array<i32: 2>} : vector<1x1x32xi32>
    %2 = vector.broadcast %0 : i32 to vector<1x1x32xi32>
    %3 = arith.addi %1, %2 : vector<1x1x32xi32>
    %4 = tpu.iota {dimensions = array<i32: 1>} : vector<1x16x1xi32>
    %false = arith.constant false
    %5 = vector.broadcast %false : i1 to vector<1x1x32xi1>
    %c2_i32 = arith.constant 2 : i32
    %6 = arith.muli %arg0, %c2_i32 : i32
    %c0_i32 = arith.constant 0 : i32
    %7 = arith.addi %6, %c0_i32 : i32
    %c2_i32_0 = arith.constant 2 : i32
    %8 = arith.muli %7, %c2_i32_0 : i32
    %9 = arith.index_cast %8 : i32 to index
    %10 = memref.load %arg2[%9] : memref<8xi32, #tpu.memory_space<smem>>
    %c1_i32 = arith.constant 1 : i32
    %11 = arith.addi %8, %c1_i32 : i32
    %12 = arith.index_cast %11 : i32 to index
    %13 = memref.load %arg2[%12] : memref<8xi32, #tpu.memory_space<smem>>
    %14 = vector.broadcast %10 : i32 to vector<1x1x32xi32>
    %15 = arith.cmpi sge, %3, %14 : vector<1x1x32xi32>
    %16 = vector.broadcast %13 : i32 to vector<1x1x32xi32>
    %17 = arith.cmpi slt, %3, %16 : vector<1x1x32xi32>
    %18 = arith.andi %15, %17 : vector<1x1x32xi1>
    %19 = arith.ori %5, %18 : vector<1x1x32xi1>
    %c2_i32_1 = arith.constant 2 : i32
    %20 = arith.muli %arg0, %c2_i32_1 : i32
    %c1_i32_2 = arith.constant 1 : i32
    %21 = arith.addi %20, %c1_i32_2 : i32
    %c2_i32_3 = arith.constant 2 : i32
    %22 = arith.muli %21, %c2_i32_3 : i32
    %23 = arith.index_cast %22 : i32 to index
    %24 = memref.load %arg2[%23] : memref<8xi32, #tpu.memory_space<smem>>
    %c1_i32_4 = arith.constant 1 : i32
    %25 = arith.addi %22, %c1_i32_4 : i32
    %26 = arith.index_cast %25 : i32 to index
    %27 = memref.load %arg2[%26] : memref<8xi32, #tpu.memory_space<smem>>
    %28 = vector.broadcast %24 : i32 to vector<1x1x32xi32>
    %29 = arith.cmpi sge, %3, %28 : vector<1x1x32xi32>
    %30 = vector.broadcast %27 : i32 to vector<1x1x32xi32>
    %31 = arith.cmpi slt, %3, %30 : vector<1x1x32xi32>
    %32 = arith.andi %29, %31 : vector<1x1x32xi1>
    %33 = arith.ori %19, %32 : vector<1x1x32xi1>
    %false_5 = arith.constant false
    %34 = vector.broadcast %false_5 : i1 to vector<1x16x1xi1>
    %c2_i32_6 = arith.constant 2 : i32
    %35 = arith.muli %arg0, %c2_i32_6 : i32
    %c0_i32_7 = arith.constant 0 : i32
    %36 = arith.addi %35, %c0_i32_7 : i32
    %c2_i32_8 = arith.constant 2 : i32
    %37 = arith.muli %36, %c2_i32_8 : i32
    %38 = arith.index_cast %37 : i32 to index
    %39 = memref.load %arg3[%38] : memref<8xi32, #tpu.memory_space<smem>>
    %c1_i32_9 = arith.constant 1 : i32
    %40 = arith.addi %37, %c1_i32_9 : i32
    %41 = arith.index_cast %40 : i32 to index
    %42 = memref.load %arg3[%41] : memref<8xi32, #tpu.memory_space<smem>>
    %43 = vector.broadcast %39 : i32 to vector<1x16x1xi32>
    %44 = arith.cmpi sge, %4, %43 : vector<1x16x1xi32>
    %45 = vector.broadcast %42 : i32 to vector<1x16x1xi32>
    %46 = arith.cmpi slt, %4, %45 : vector<1x16x1xi32>
    %47 = arith.andi %44, %46 : vector<1x16x1xi1>
    %48 = arith.ori %34, %47 : vector<1x16x1xi1>
    %c2_i32_10 = arith.constant 2 : i32
    %49 = arith.muli %arg0, %c2_i32_10 : i32
    %c1_i32_11 = arith.constant 1 : i32
    %50 = arith.addi %49, %c1_i32_11 : i32
    %c2_i32_12 = arith.constant 2 : i32
    %51 = arith.muli %50, %c2_i32_12 : i32
    %52 = arith.index_cast %51 : i32 to index
    %53 = memref.load %arg3[%52] : memref<8xi32, #tpu.memory_space<smem>>
    %c1_i32_13 = arith.constant 1 : i32
    %54 = arith.addi %51, %c1_i32_13 : i32
    %55 = arith.index_cast %54 : i32 to index
    %56 = memref.load %arg3[%55] : memref<8xi32, #tpu.memory_space<smem>>
    %57 = vector.broadcast %53 : i32 to vector<1x16x1xi32>
    %58 = arith.cmpi sge, %4, %57 : vector<1x16x1xi32>
    %59 = vector.broadcast %56 : i32 to vector<1x16x1xi32>
    %60 = arith.cmpi slt, %4, %59 : vector<1x16x1xi32>
    %61 = arith.andi %58, %60 : vector<1x16x1xi1>
    %62 = arith.ori %48, %61 : vector<1x16x1xi1>
    %63 = vector.broadcast %33 : vector<1x1x32xi1> to vector<1x16x32xi1>
    %64 = vector.broadcast %62 : vector<1x16x1xi1> to vector<1x16x32xi1>
    %65 = arith.ori %63, %64 : vector<1x16x32xi1>
    %c0 = arith.constant 0 : index
    %c0_14 = arith.constant 0 : index
    %c0_15 = arith.constant 0 : index
    %66 = vector.load %arg4[%c0, %c0_14, %c0_15] : memref<1x16x32xf32, #tpu.memory_space<vmem>>, vector<1x16x32xf32>
    %cst = arith.constant 0.000000e+00 : f32
    %67 = vector.broadcast %cst : f32 to vector<1x16x32xf32>
    %68 = arith.select %65, %67, %66 : vector<1x16x32xi1>, vector<1x16x32xf32>
    %c0_16 = arith.constant 0 : index
    %c0_17 = arith.constant 0 : index
    %c0_18 = arith.constant 0 : index
    %69 = vector.load %arg5[%c0_16, %c0_17, %c0_18] : memref<1x16x32xf32, #tpu.memory_space<vmem>>, vector<1x16x32xf32>
    tpu.vector_store %arg5[%c0_16, %c0_17, %c0_18], %68 {strides = array<i32>} : memref<1x16x32xf32, #tpu.memory_space<vmem>>, vector<1x16x32xf32>,
    return
  }
  func.func @transform_0(%arg0: i32, %arg1: i32, %arg2: memref<8xi32, #tpu.memory_space<smem>>, %arg3: memref<8xi32, #tpu.memory_space<smem>>) -> (i32, i32, i32) {
    %c0_i32 = arith.constant 0 : i32
    %c0_i32_0 = arith.constant 0 : i32
    return %arg0, %c0_i32, %arg1 : i32, i32, i32
  }
  func.func @transform_1(%arg0: i32, %arg1: i32, %arg2: memref<8xi32, #tpu.memory_space<smem>>, %arg3: memref<8xi32, #tpu.memory_space<smem>>) -> (i32, i32, i32) {
    %c0_i32 = arith.constant 0 : i32
    %c0_i32_0 = arith.constant 0 : i32
    return %arg0, %c0_i32, %arg1 : i32, i32, i32
  }
}

</mosaic_0001>

<bundles_post_ra>
// kernel: tpu_custom_call.1
= control target key start
LH: loop header
LB: loop body
LE: loop exit
PB: predicated region body
PF: predicated region fallthrough
CT: control target
= control target key end

     0   :  { %s830_s0 = inlined_call_operand.hbm [shape: s32[8], index: 0, kind: input, shape index: {}]   ;;  %s831_s2 = inlined_call_operand.hbm [shape: f32[2,16,32], index: 2, kind: input, shape index: {}, may-alias: {2,3}]   ;;  %s832_s3 = inlined_call_operand.hbm [shape: f32[2,16,32], index: 3, kind: output, shape index: {}, may-alias: {2,3}]   ;;  %s833_s1 = inlined_call_operand.vmem [shape: s32[8], index: 1, kind: input, shape index: {}]  }
   0x1   :  { %s419_s14 = scalar_lea.hbm %s830_s0, 16 }
   0x2   :  { %p420_p0 = scmp.ne.s32.totalorder %s830_s0, %s419_s14  ;;  %p423_p1 = scmp.lt.u32.totalorder %s419_s14, %s830_s0 }
   0x4   :  { %p425_p2 = pnand %p423_p1, %p420_p0 }
   0x6   :  { %428 = shalt.err (!%p425_p2)  }
   0x7   :  { %s557_s19 = smov [#allocation3]   ;;  %s10_s24 = sshll.u32 %s833_s1, 4  ;;  %s11_s24 = int_to_ptr.vmem [resolvable:$true] %s10_s24 }
   0x8   :  { %9 = dma.hbm_to_smem %s830_s0, 16, %s557_s19, [#allocation2] }
   0x9   :  { %s429_s25 = scalar_lea.vmem %s11_s24, 16  ;;  %p434_p4 = scmp.lt.s32.totalorder %s11_s24, %s11_s24 }
   0xa   :  { %p430_p3 = scmp.ne.s32.totalorder %s11_s24, %s429_s25  ;;  %p435_p5 = scmp.lt.s32.totalorder %s429_s25, %s429_s25 }
   0xc   :  { %p436_p6 = por %p435_p5, %p434_p4 }
   0xe   :  { %p437_p7 = pnand %p436_p6, %p430_p3 }
  0x10   :  { %440 = shalt.err (!%p437_p7)  }
  0x11   :  { %s558_s26 = smov [#allocation4]  }
  0x12   :  { %13 = dma.vmem_to_smem %s11_s24, 16, %s558_s26, [#allocation2] }
  0x13   :  { %523 = dma.done.wait [#allocation2], 32 }
  0x14   :  { %524 = vsyncadd [#allocation2], 4294967264 }
  0x15   :  { %15 = sfence }
  0x16   :  { %16 = vsyncpa [#allocation6], 0 }
  0x17   :  { %18 = vsyncpa [#allocation6 + $0x1], 0 }
  0x18   :  { %19 = vsyncpa [#allocation7], 0 }
  0x19   :  { %21 = vsyncpa [#allocation7 + $0x1], 0  ;;  %s600_s0 = smov 0   ;;  %s602_s1 = smov 0  }
  0x1a   :  { %s604_s27 = smov 0   ;;  %s606_s28 = smov 0  }
  0x1b   :  { %s608_s29 = smov 0   ;;  %s610_s30 = smov 0  }
  0x1c LB: > { %s328_s4 = sadd.s32 4294967295, %s555_s30   ;;  %s329_s5 = sadd.s32 4294967294, %s555_s30   ;;  %s555_s30 = sphi %s610_s30, %s27_s30   ;;  %s551_s29 = sphi %s608_s29, %s860_s29   ;;  %s547_s28 = sphi %s606_s28, %s859_s28   ;;  %s543_s27 = sphi %s604_s27, %s858_s27   ;;  %s539_s1 = sphi %s602_s1, %s857_s1   ;;  %s535_s0 = sphi %s600_s0, %s856_s0  }
  0x1d   : > { %s39_s6 = sadd.s32 1, %s551_s29  ;;  %s48_s7 = sadd.s32 1, %s543_s27 }
  0x1e   : > { %p41_p8 = scmp.ge.s32.totalorder %s39_s6, 2  ;;  %p55_p9 = scmp.ne.s32.totalorder %s543_s27, %s539_s1 }
  0x1f   : > { %p56_p10 = scmp.eq.s32.totalorder %s555_s30, 0  ;;  %p61_p11 = scmp.ne.s32.totalorder %s539_s1, %s535_s0 }
  0x20   : > { %s862_s6 = smov (%p41_p8, %s39_s6), 0  ;;  %p62_p13 = scmp.eq.s32.totalorder %s328_s4, 0 }
  0x21   : > { %p641_p12 = por %p56_p10, %p55_p9  ;;  %s43_s9 = ssub.s32 %s551_s29, %s862_s6 }
  0x22   : > { %p87_p0 = scmp.eq.s32.totalorder %s328_s4, 1  ;;  %p46_p1 = scmp.eq.s32.totalorder %s43_s9, 0 }
  0x23   : > { %p647_p2 = por %p62_p13, %p61_p11  ;;  %p93_p4 = scmp.eq.s32.totalorder %s329_s5, 1 }
  0x24   : > { %p651_p3 = por %p87_p0, %p55_p9  ;;  %p363_p7 = scmp.lt.s32.totalorder %s555_s30, 2 }
  0x25   : > { %s656_s12 = scalar_select %p46_p1, %s543_s27, %s48_s7  }
  0x26   : > { %s837_s11 = scalar_select %p651_p3, 1, 0 }
  0x27   : > { %p658_p5 = por %p93_p4, %p61_p11  ;;  %s113_s14 = sand.u32 1, %s543_s27  }
  0x28   : > { %s332_s15 = sshll.u32 %s113_s14, 4  ;;  %s346_s16 = sshll.u32 %s551_s29, 8 }
  0x29   : > { %s838_s13 = scalar_select %p658_p5, 1, 0 }
  0x2a   : > { %s669_s19 = scalar_lea.hbm %s831_s2, %s346_s16  ;;  %s117_s20 = scalar_lea.vmem [#allocation5], %s332_s15 }
  0x2b   : > { %s125_s21 = sshll.u32 %s117_s20, 4  ;;  %p675_p8 = pnand %p363_p7, %p641_p12  ;;  %s671_s21 = int_to_ptr.vmem [resolvable:$true] %s125_s21 }
  0x2c   : > { %s680_s23 = scalar_lea.sflag [#allocation6], %s113_s14  ;;  %s441_s24 = scalar_lea.hbm %s669_s19, 256 }
  0x2d   : > { %p442_p10 = scmp.ne.s32.totalorder %s669_s19, %s441_s24  ;;  %p443_p11 = pneg %p675_p8 }
  0x2e   : > { %s446_s4 = scalar_lea.hbm %s831_s2, 512  ;;  %p447_p12 = scmp.lt.u32.totalorder %s669_s19, %s831_s2 }
  0x2f   : > { %p444_p13 = pnand %p443_p11, %p442_p10  ;;  %p448_p1 = scmp.lt.u32.totalorder %s446_s4, %s441_s24 }
  0x30   : > { %p450_p7 = scmp.lt.u32.totalorder %s441_s24, %s669_s19 }
  0x31   : > { %p445_p0 = pneg %p444_p13  ;;  %p449_p4 = por %p448_p1, %p447_p12 }
  0x33   : > { %p451_p6 = por %p450_p7, %p449_p4 }
  0x35   : > { %p452_p9 = pnand %p451_p6, %p445_p0 }
  0x37   : > { %455 = shalt.err (!%p452_p9)
}
  0x38   : > { %s456_s8 = scalar_lea.vmem %s671_s21, 256  ;;  %s559_s9 = smov [#allocation5]  }
  0x39   : > { %p457_p10 = scmp.ne.s32.totalorder %s671_s21, %s456_s8  ;;  %s461_s14 = sshll.u32 %s559_s9, 4  ;;  %s462_s14 = int_to_ptr.vmem [resolvable:$false] %s461_s14 }
  0x3a   : > { %s463_s15 = scalar_lea.vmem %s462_s14, 512  ;;  %p464_p3 = scmp.lt.s32.totalorder %s671_s21, %s462_s14 }
  0x3b   : > { %p459_p13 = pnand %p457_p10, %p443_p11  ;;  %p465_p12 = scmp.lt.s32.totalorder %s463_s15, %s456_s8 }
  0x3d   : > { %p460_p5 = pneg %p459_p13  ;;  %p466_p1 = por %p465_p12, %p464_p3 }
  0x3f   : > { %p467_p4 = pnand %p466_p1, %p460_p5 }
  0x41   : > { %470 = shalt.err (!%p467_p4)
}
  0x42   : > { %s560_s16 = smov 128   ;;  %s561_s17 = smov 8  }
  0x43   : > { %358 = dma.hbm_to_vmem [thread:$0]  (!%p675_p8), %s669_s19, 256, %s671_s21, %s680_s23, %s560_s16, %s560_s16, %s561_s17  }
  0x44   : > { %p133_p6 = scmp.lt.s32.totalorder %s555_s30, 3  ;;  %p840_p9 = scmp.ge.s32.totalorder %s555_s30, 1 }
  0x46   : > { %p134_p11 = pnand %p840_p9, %p133_p6 }
  0x47   : > { %s712_s18 = sand.u32 (!%p134_p11), 1, %s539_s1  }
  0x48   : > { %137 = sbr.rel (%p134_p11) target bundleno = 118 (0x76), region = 24  ;;  %s336_s20 = sshll.u32 (!%p134_p11), %s712_s18, 4 }
  0x49   : > { %s140_s24 = scalar_lea.sflag (!%p134_p11), [#allocation6], %s712_s18  ;;  %s718_s25 = scalar_lea.vmem (!%p134_p11), [#allocation5], %s336_s20 }
  0x4f   : > { %526 = dma.done.wait (%p647_p2), %s140_s24, 256  }
  0x50   : > { %528 = vsyncadd (%p647_p2), %s140_s24, 4294967040  ;;  %s338_s19 = sshll.u32 %s547_s28, 2  ;;  %v163_v0 = vlaneseq  ;;  %v221_v16 = vld [vmem:[%s718_s25] sm:$0xff]  ;;  %s161_s10 = scalar_lea.vmem [#allocation8], %s336_s20  ;;  %v222_v20 = vld [vmem:[%s718_s25 + $0x8] sm:$0xff] }
  0x51   : > { %s171_s21 = sld [smem:[#allocation3 + %s338_s19]]  ;;  %s172_s22 = sadd.s32 1, %s338_s19 }
  0x52   : > { %s173_s23 = sld [smem:[#allocation3 + %s172_s22]]  ;;  %s348_s26 = sadd.s32 2, %s338_s19  ;;  %v164_v1 = vand.u32 127, %v163_v0  ;;  %v168_v2 = vshrl.u32 %v163_v0, 7 }
  0x53   : > { %s182_s4 = sld [smem:[#allocation3 + %s348_s26]]  ;;  %s183_s5 = sadd.s32 1, %s348_s26 }
  0x54   : > { %s184_s7 = sld [smem:[#allocation3 + %s183_s5]]  ;;  %v169_v10 = vadd.s32 8, %v168_v2  ;;  %s243_s16 = sshll.u32 %s161_s10, 4  ;;  %s772_s16 = int_to_ptr.vmem [resolvable:$true] %s243_s16 }
  0x55   : > { %s191_s8 = sld [smem:[#allocation4 + %s338_s19]]  ;;  %s349_s17 = sshll.u32 %s547_s28, 8 }
  0x56   : > { %s192_s9 = sld [smem:[#allocation4 + %s172_s22]]  ;;  %s780_s19 = scalar_lea.hbm %s832_s3, %s349_s17 }
  0x57   : > { %s725_s14 = sld [smem:[#allocation4 + %s348_s26]]  ;;  %v174_v3 = vstv %s171_s21  ;;  %s229_s28 = scalar_lea.sflag [#allocation7], %s712_s18 }
  0x58   : > { %s727_s15 = sld [smem:[#allocation4 + %s183_s5]]  ;;  %vm729_vm0 = vcmp.ge.s32.totalorder %v164_v1, %v174_v3  ;;  %v176_v5 = vstv %s173_s23  ;;  %s471_s21 = scalar_lea.vmem %s772_s16, 256 }
  0x59   : > { %vm733_vm1 = vcmp.lt.s32.totalorder %v164_v1, %v176_v5  ;;  %v185_v7 = vstv %s182_s4  ;;  %p472_p2 = scmp.ne.s32.totalorder %s772_s16, %s471_s21  ;;  %p853_p3 = scmp.ne.s32.totalorder %s837_s11, 0 }
  0x5a   : > { %vm178_vm2 = vmand %vm729_vm0, %vm733_vm1  ;;  %vm186_vm3 = vcmp.ge.s32.totalorder %v164_v1, %v185_v7  ;;  %v187_v8 = vstv %s184_s7  ;;  %vm225_vm0 = vcmask 261120   ;;  %s562_s22 = smov [#allocation8]  }
  0x5b   : > { %v193_v9 = vstv %s191_s8  ;;  %vm188_vm4 = vcmp.lt.s32.totalorder %v164_v1, %v187_v8  ;;  %p473_p5 = pnand %p472_p2, %p853_p3  ;;  %s475_s25 = sshll.u32 %s562_s22, 4  ;;  %s476_s25 = int_to_ptr.vmem [resolvable:$false] %s475_s25 }
  0x5c   : > { %vm741_vm5 = vcmp.ge.s32.totalorder %v168_v2, %v193_v9  ;;  %v196_v12 = vstv %s192_s9  ;;  %vm189_vm6 = vmand %vm186_vm3, %vm188_vm4  ;;  %vm754_vm13 = vcmp.ge.s32.totalorder %v169_v10, %v193_v9  ;;  %s477_s23 = scalar_lea.vmem %s476_s25, 512  ;;  %p478_p0 = scmp.lt.s32.totalorder %s772_s16, %s476_s25 }
  0x5d   : > { %v203_v13 = vstv %s725_s14  ;;  %vm197_vm7 = vcmp.lt.s32.totalorder %v168_v2, %v196_v12  ;;  %vm747_vm9 = vmor %vm178_vm2, %vm189_vm6  ;;  %vm758_vm14 = vcmp.lt.s32.totalorder %v169_v10, %v196_v12  ;;  %p474_p8 = pneg %p473_p5  ;;  %p479_p7 = scmp.lt.s32.totalorder %s477_s23, %s471_s21 }
  0x5e   : > { %vm204_vm8 = vcmp.ge.s32.totalorder %v168_v2, %v203_v13  ;;  %v206_v14 = vstv %s727_s15  ;;  %vm199_vm11 = vmand %vm741_vm5, %vm197_vm7  ;;  %vm205_vm1 = vcmp.ge.s32.totalorder %v169_v10, %v203_v13 }
  0x5f   : > { %vm207_vm10 = vcmp.lt.s32.totalorder %v168_v2, %v206_v14  ;;  %vm208_vm2 = vcmp.lt.s32.totalorder %v169_v10, %v206_v14  ;;  %vm200_vm4 = vmand %vm754_vm13, %vm758_vm14  ;;  %p480_p10 = por %p479_p7, %p478_p0 }
  0x60   : > { %vm209_vm12 = vmand %vm204_vm8, %vm207_vm10 }
  0x61   : > { %vm211_vm15 = vmor %vm199_vm11, %vm209_vm12  ;;  %p481_p13 = pnand %p480_p10, %p474_p8 }
  0x62   : > { %vm219_vm3 = vmor %vm747_vm9, %vm211_vm15 }
  0x63   : > { %v223_v19 = vsel %vm219_vm3, 0.0, %v221_v16  ;;  %vm210_vm5 = vmand %vm205_vm1, %vm208_vm2 }
  0x64   : > { %226 = vst.msk [vmem:[%s161_s10] sm:$0xff] %vm225_vm0, %v223_v19  ;;  %vm212_vm6 = vmor %vm200_vm4, %vm210_vm5 }
  0x65   : > { %vm220_vm7 = vmor %vm747_vm9, %vm212_vm6 }
  0x66   : > { %v224_v21 = vsel %vm220_vm7, 0.0, %v222_v20 }
  0x67   : > { %227 = vst.msk [vmem:[%s161_s10 + $0x8] sm:$0xff] %vm225_vm0, %v224_v21 }
  0x68   : > { %484 = shalt.err (!%p481_p13)
}
  0x69   : > { %s485_s26 = scalar_lea.hbm %s780_s19, 256  ;;  %s489_s7 = scalar_lea.hbm %s832_s3, 512 }
  0x6a   : > { %p486_p12 = scmp.ne.s32.totalorder %s780_s19, %s485_s26  ;;  %p490_p6 = scmp.lt.u32.totalorder %s780_s19, %s832_s3 }
  0x6b   : > { %p491_p9 = scmp.lt.u32.totalorder %s489_s7, %s485_s26  ;;  %p493_p2 = scmp.lt.u32.totalorder %s485_s26, %s780_s19 }
  0x6c   : > { %p487_p1 = pnand %p486_p12, %p853_p3 }
  0x6d   : > { %p492_p11 = por %p491_p9, %p490_p6 }
  0x6e   : > { %p488_p4 = pneg %p487_p1 }
  0x6f   : > { %p494_p5 = por %p493_p2, %p492_p11 }
  0x71   : > { %p495_p8 = pnand %p494_p5, %p488_p4 }
  0x73   : > { %498 = shalt.err (!%p495_p8)
}
  0x74   : > { %s563_s14 = smov 128   ;;  %s564_s15 = smov 8  }
  0x75   : > { %353 = dma.vmem_to_hbm [thread:$0]  (%p853_p3), %s772_s16, 256, %s780_s19, %s229_s28, %s563_s14, %s563_s14, %s564_s15  }
  0x76 PF: > { %s258_s10 = sand.u32 1, %s535_s0   ;;  %p854_p0 = scmp.ne.s32.totalorder %s838_s13, 0 }
  0x77   : > { %p855_p7 = scmp.ge.s32.totalorder %s555_s30, 2  ;;  %s259_s17 = scalar_lea.sflag [#allocation7], %s258_s10 }
  0x79   : > { %p360_p10 = pnand %p855_p7, %p854_p0 }
  0x7b   : > { %530 = dma.done.wait (!%p360_p10), %s259_s17, 256  }
  0x7c   : > { %532 = vsyncadd (!%p360_p10), %s259_s17, 4294967040  ;;  %s27_s30 = sadd.s32 1, %s555_s30   ;;  %s856_s0 = smov %s539_s1 }
  0x7d   : > { %p24_p13 = scmp.ge.s32.totalorder %s27_s30, 4   ;;  %s857_s1 = smov %s543_s27 }
  0x7e   : > { %s858_s27 = smov %s656_s12  ;;  %s859_s28 = smov %s551_s29 }
  0x7f   : > { %s860_s29 = smov %s862_s6  ;;  %26 = sbr.rel (!%p24_p13) target bundleno = 28 (0x1c), region = 69 }
  0x86   :  { %264 = vsyncpa [#allocation6], 1 }
  0x87   :  { %266 = vsyncpa [#allocation6 + $0x1], 1 }
  0x88   :  { %267 = vsyncpa [#allocation7], 1 }
  0x89   :  { %269 = vsyncpa [#allocation7 + $0x1], 1 }

</bundles_post_ra>
